<compile_context>
chip_gen: v5e
topology: v5e:2x2
jax: 0.10.0
libtpu: 0.0.40
codegen_flags: <defaults>
</compile_context>

<pallas_src>
import functools

import jax
import jax.numpy as jnp
from jax.experimental import pallas as pl
from jax.experimental.pallas import tpu as pltpu

LN_EPS = 1e-5
_INV_SQRT2 = 0.7071067811865476


def _cdiv(a, b):
    return -(-a // b)


def _round_up(x, m):
    return _cdiv(x, m) * m


def _vmem_config():
    """Returns (tile-sizing VMEM budget bytes, vmem_limit_bytes or None)."""
    try:
        cap = int(pltpu.get_tpu_info().vmem_capacity_bytes)
    except Exception:
        # Unknown chip / query failed: stay inside any default scoped VMEM.
        return 8 << 20, None
    if cap >= (128 << 20):          # v5e / v6e: 128 MiB physical VMEM
        return 32 << 20, 64 << 20   # raise v5e's 16 MiB default scoped limit
    if cap >= (64 << 20):           # v7x: 64 MiB physical per TensorCore
        return 16 << 20, 32 << 20
    return max(4 << 20, cap // 8), None


_VMEM_BUDGET, _VMEM_LIMIT = _vmem_config()


def _out_mc_kernel(x_ref, gw_ref, sc_ref, o_ref):
    # x_ref : (bm, D) tile of rows
    # gw_ref: (1, D) f32  = gamma * w
    # sc_ref: (2,)  f32 in SMEM = [b + beta.w, sum(gamma*w)]
    # o_ref : (1, bm) lane-dense output row
    d = x_ref.shape[-1]
    x = x_ref[...].astype(jnp.float32)

    # Exact (erf-based) GELU, matching torch.nn.GELU() default.
    # (A bf16-input fast path on the VPU is possible on v6e/v7x but kept f32 here
    #  for exactness across generations.)
    g = 0.5 * x * (1.0 + jax.lax.erf(x * _INV_SQRT2))

    # Raw-moment LayerNorm + folded Linear(D, 1): three *independent* lane
    # reductions (pipeline back-to-back on the XLU ports), no (bm, D) `centered`
    # temporary and one fewer full-tile VALU pass.
    inv_d = 1.0 / d
    s1 = jnp.sum(g, axis=-1, keepdims=True)                  # (bm, 1)
    s2 = jnp.sum(g * g, axis=-1, keepdims=True)              # (bm, 1)
    s3 = jnp.sum(g * gw_ref[...], axis=-1, keepdims=True)    # (bm, 1)

    mean = s1 * inv_d
    var = s2 * inv_d - mean * mean
    inv_std = jax.lax.rsqrt(var + LN_EPS)

    const = sc_ref[0]      # b + beta @ w
    sum_gw = sc_ref[1]     # sum(gamma * w)

    # TODO(synk): nn.Dropout omitted (identity at inference time).
    out_col = inv_std * (s3 - mean * sum_gw) + const         # (bm, 1)

    # Lane-dense store: one full-width (1, bm) row per grid step.
    o_ref[...] = out_col[:, 0].reshape(1, -1).astype(o_ref.dtype)


@functools.partial(jax.jit, static_argnames=("block_rows",))
def out_multi_choices(x, gamma, beta, w, b, *, block_rows=4096):
    """x: (..., D) -> (..., 1).  gamma/beta: (D,), w: (D,) or (1, D), b: scalar."""
    orig_shape = x.shape
    D = orig_shape[-1]
    x2d = x.reshape(-1, D)
    n_rows = x2d.shape[0]

    # Fold LayerNorm affine + linear bias on the host (f32 for precision):
    #   y @ w + b = inv_std * (sum(g*gw) - mean*sum(gw)) + (b + beta @ w)
    gamma_f = gamma.reshape(-1).astype(jnp.float32)
    beta_f = beta.reshape(-1).astype(jnp.float32)
    w_f = w.reshape(-1).astype(jnp.float32)
    gw = (gamma_f * w_f).reshape(1, D)
    scalars = jnp.stack([
        jnp.asarray(b, jnp.float32) + jnp.sum(beta_f * w_f),   # const
        jnp.sum(gamma_f * w_f),                                 # sum_gw
    ])                                                          # (2,) f32 -> SMEM

    in_itemsize = jnp.dtype(x.dtype).itemsize
    sub = {4: 8, 2: 16, 1: 32}.get(in_itemsize, 8)   # sublane tile for input dtype

    # Row-tile sizing (generation aware): double-buffered input tile plus ~4 live
    # f32 (bm, D) temporaries must fit the per-generation VMEM budget.
    est_per_row = 2 * D * in_itemsize + 4 * D * 4
    cap_rows = min(block_rows, _VMEM_BUDGET // est_per_row)
    if cap_rows >= 128:
        bm = (cap_rows // 128) * 128                 # lane-dense (1, bm) out blocks
        # Keep >= 2 grid steps when possible so v7x can use both TensorCores.
        bm = min(bm, _round_up(_cdiv(n_rows, 2), 128))
    else:
        bm = max(sub, (cap_rows // sub) * sub)       # huge-D fallback
    full = _round_up(n_rows, sub)
    if bm >= full:
        bm = full                                    # single full-extent tile
    n_tiles = _cdiv(n_rows, bm)

    out = pl.pallas_call(
        _out_mc_kernel,
        out_shape=jax.ShapeDtypeStruct((1, n_tiles * bm), x.dtype),
        grid_spec=pltpu.PrefetchScalarGridSpec(
            num_scalar_prefetch=0,
            grid=(n_tiles,),
            in_specs=[
                pl.BlockSpec((bm, D), lambda i: (i, 0)),
                pl.BlockSpec((1, D), lambda i: (0, 0)),
                pl.BlockSpec(memory_space=pltpu.MemorySpace.SMEM),
            ],
            out_specs=pl.BlockSpec((1, bm), lambda i: (0, i)),
        ),
        compiler_params=pltpu.CompilerParams(
            dimension_semantics=("parallel",),
            vmem_limit_bytes=_VMEM_LIMIT),
    )(x2d, gw, scalars)

    # Partial last tile produces garbage in the padded slots; slice them off.
    out = out.reshape(-1)[:n_rows]
    return out.reshape(orig_shape[:-1] + (1,))


def _reference(x, gamma, beta, w, b):
    xf = x.astype(jnp.float32)
    g = 0.5 * xf * (1.0 + jax.lax.erf(xf * _INV_SQRT2))
    mean = jnp.mean(g, axis=-1, keepdims=True)
    var = jnp.mean((g - mean) ** 2, axis=-1, keepdims=True)
    xn = (g - mean) * jax.lax.rsqrt(var + LN_EPS)
    y = xn * gamma.reshape(-1) + beta.reshape(-1)
    out = jnp.sum(y * w.reshape(-1), axis=-1, keepdims=True) + b
    return out.astype(x.dtype)


if __name__ == "__main__":
    key = jax.random.PRNGKey(0)
    batch, num_choices, embed_dim = 2, 4, 128
    k_x, k_w, k_b, k_g, k_be, k_x2 = jax.random.split(key, 6)

    # --- test 1: module-shaped input, default LN params (single tile) ---
    x = jax.random.normal(k_x, (batch, num_choices, embed_dim), dtype=jnp.float32)
    gamma = jnp.ones((embed_dim,), jnp.float32)
    beta = jnp.zeros((embed_dim,), jnp.float32)
    bound = 1.0 / (embed_dim ** 0.5)
    w = jax.random.uniform(k_w, (embed_dim,), jnp.float32, -bound, bound)
    b = jax.random.uniform(k_b, (), jnp.float32, -bound, bound)

    out = out_multi_choices(x, gamma, beta, w, b)
    jax.block_until_ready(out)
    ref = _reference(x, gamma, beta, w, b)
    assert out.shape == (batch, num_choices, 1), out.shape
    err = float(jnp.max(jnp.abs(out - ref)))
    assert jnp.allclose(out, ref, atol=1e-4, rtol=1e-4), err

    # --- test 2: multi-tile grid with a partial last tile, non-trivial affine ---
    x2 = jax.random.normal(k_x2, (5, 131, embed_dim), dtype=jnp.float32)
    gamma2 = 1.0 + 0.1 * jax.random.normal(k_g, (embed_dim,), jnp.float32)
    beta2 = 0.1 * jax.random.normal(k_be, (embed_dim,), jnp.float32)
    out2 = out_multi_choices(x2, gamma2, beta2, w, b)
    jax.block_until_ready(out2)
    ref2 = _reference(x2, gamma2, beta2, w, b)
    assert out2.shape == (5, 131, 1), out2.shape
    err2 = float(jnp.max(jnp.abs(out2 - ref2)))
    assert jnp.allclose(out2, ref2, atol=1e-4, rtol=1e-4), err2

    print("KERNEL_OK")
</pallas_src>

<mosaic_0001>
module attributes {stable_mosaic.version = 11 : i64} {
  func.func @_out_mc_kernel(%arg0: i32, %arg1: memref<8x128xf32, #tpu.memory_space<vmem>>, %arg2: memref<1x128xf32, #tpu.memory_space<vmem>>, %arg3: memref<2xf32, #tpu.memory_space<smem>>, %arg4: memref<1x8xf32, #tpu.memory_space<vmem>>) attributes {dimension_semantics = [#tpu.dimension_semantics<parallel>], iteration_bounds = array<i64: 1>, scalar_prefetch = 0 : i64, scratch_operands = 0 : i64, tpu.core_type = #tpu.core_type<tc>, window_params = [{transform_indices = @transform_0, window_bounds = array<i64: 8, 128>}, {pipeline_mode = #tpu.pipeline_mode<synchronous>, transform_indices = @transform_1, window_bounds = array<i64: 1, 128>}, {transform_indices = @transform_2, window_bounds = array<i64: 2>}, {transform_indices = @transform_3, window_bounds = array<i64: 1, 8>}]} {
    %c0 = arith.constant 0 : index
    %c0_0 = arith.constant 0 : index
    %0 = vector.load %arg1[%c0, %c0_0] : memref<8x128xf32, #tpu.memory_space<vmem>>, vector<8x128xf32>
    %cst = arith.constant 5.000000e-01 : f32
    %1 = vector.broadcast %cst : f32 to vector<8x128xf32>
    %2 = arith.mulf %1, %0 : vector<8x128xf32>
    %cst_1 = arith.constant 0.707106769 : f32
    %3 = vector.broadcast %cst_1 : f32 to vector<8x128xf32>
    %4 = arith.mulf %0, %3 : vector<8x128xf32>
    %5 = math.erf %4 : vector<8x128xf32>
    %cst_2 = arith.constant 1.000000e+00 : f32
    %6 = vector.broadcast %cst_2 : f32 to vector<8x128xf32>
    %7 = arith.addf %6, %5 : vector<8x128xf32>
    %8 = arith.mulf %2, %7 : vector<8x128xf32>
    %cst_3 = arith.constant dense<0.000000e+00> : vector<8xf32>
    %9 = vector.multi_reduction <add>, %8, %cst_3 [1] : vector<8x128xf32> to vector<8xf32>
    %10 = vector.shape_cast %9 : vector<8xf32> to vector<8x1xf32>
    %11 = arith.mulf %8, %8 : vector<8x128xf32>
    %cst_4 = arith.constant dense<0.000000e+00> : vector<8xf32>
    %12 = vector.multi_reduction <add>, %11, %cst_4 [1] : vector<8x128xf32> to vector<8xf32>
    %13 = vector.shape_cast %12 : vector<8xf32> to vector<8x1xf32>
    %c0_5 = arith.constant 0 : index
    %c0_6 = arith.constant 0 : index
    %14 = vector.load %arg2[%c0_5, %c0_6] : memref<1x128xf32, #tpu.memory_space<vmem>>, vector<1x128xf32>
    %15 = vector.broadcast %14 : vector<1x128xf32> to vector<8x128xf32>
    %16 = arith.mulf %8, %15 : vector<8x128xf32>
    %cst_7 = arith.constant dense<0.000000e+00> : vector<8xf32>
    %17 = vector.multi_reduction <add>, %16, %cst_7 [1] : vector<8x128xf32> to vector<8xf32>
    %18 = vector.shape_cast %17 : vector<8xf32> to vector<8x1xf32>
    %cst_8 = arith.constant 7.812500e-03 : f32
    %19 = vector.broadcast %cst_8 : f32 to vector<8x1xf32>
    %20 = arith.mulf %10, %19 : vector<8x1xf32>
    %cst_9 = arith.constant 7.812500e-03 : f32
    %21 = vector.broadcast %cst_9 : f32 to vector<8x1xf32>
    %22 = arith.mulf %13, %21 : vector<8x1xf32>
    %23 = arith.mulf %20, %20 : vector<8x1xf32>
    %24 = arith.subf %22, %23 : vector<8x1xf32>
    %cst_10 = arith.constant 9.99999974E-6 : f32
    %25 = vector.broadcast %cst_10 : f32 to vector<8x1xf32>
    %26 = arith.addf %24, %25 : vector<8x1xf32>
    %27 = math.rsqrt %26 : vector<8x1xf32>
    %c0_11 = arith.constant 0 : index
    %28 = memref.load %arg3[%c0_11] : memref<2xf32, #tpu.memory_space<smem>>
    %c1 = arith.constant 1 : index
    %29 = memref.load %arg3[%c1] : memref<2xf32, #tpu.memory_space<smem>>
    %30 = vector.broadcast %29 : f32 to vector<8x1xf32>
    %31 = arith.mulf %20, %30 : vector<8x1xf32>
    %32 = arith.subf %18, %31 : vector<8x1xf32>
    %33 = arith.mulf %27, %32 : vector<8x1xf32>
    %34 = vector.broadcast %28 : f32 to vector<8x1xf32>
    %35 = arith.addf %33, %34 : vector<8x1xf32>
    %36 = vector.shape_cast %35 : vector<8x1xf32> to vector<8xf32>
    %37 = vector.shape_cast %36 : vector<8xf32> to vector<1x8xf32>
    %c0_12 = arith.constant 0 : index
    %c0_13 = arith.constant 0 : index
    %38 = vector.load %arg4[%c0_12, %c0_13] : memref<1x8xf32, #tpu.memory_space<vmem>>, vector<1x8xf32>
    tpu.vector_store %arg4[%c0_12, %c0_13], %37 {strides = array<i32>} : memref<1x8xf32, #tpu.memory_space<vmem>>, vector<1x8xf32>,
    return
  }
  func.func @transform_0(%arg0: i32) -> (i32, i32) {
    %c0_i32 = arith.constant 0 : i32
    %c0_i32_0 = arith.constant 0 : i32
    return %arg0, %c0_i32 : i32, i32
  }
  func.func @transform_1(%arg0: i32) -> (i32, i32) {
    %c0_i32 = arith.constant 0 : i32
    %c0_i32_0 = arith.constant 0 : i32
    %c0_i32_1 = arith.constant 0 : i32
    return %c0_i32, %c0_i32_0 : i32, i32
  }
  func.func @transform_2(%arg0: i32) -> i32 {
    %c0_i32 = arith.constant 0 : i32
    %c0_i32_0 = arith.constant 0 : i32
    return %c0_i32 : i32
  }
  func.func @transform_3(%arg0: i32) -> (i32, i32) {
    %c0_i32 = arith.constant 0 : i32
    %c0_i32_0 = arith.constant 0 : i32
    return %c0_i32, %arg0 : i32, i32
  }
}

</mosaic_0001>

<bundles_post_ra>
// kernel: out_multi_choices.1
= control target key start
LH: loop header
LB: loop body
LE: loop exit
PB: predicated region body
PF: predicated region fallthrough
CT: control target
= control target key end

     0   :  { %8 = vsyncpa [#allocation3], 0  ;;  %s141_s15 = smov [#allocation2]   ;;  %s174_s0 = inlined_call_operand.vmem [shape: f32[8,128], index: 0, kind: input, shape index: {}]   ;;  %s175_s1 = inlined_call_operand.vmem [shape: f32[1,128], index: 1, kind: input, shape index: {}]   ;;  %s176_s2 = inlined_call_operand.vmem [shape: f32[2], index: 2, kind: input, shape index: {}]   ;;  %s177_s3 = inlined_call_operand.vmem [shape: f32[1,8], index: 3, kind: output, shape index: {}]  }
   0x1   :  { %s18_s14 = sshll.u32 %s176_s2, 4  ;;  %s19_s14 = int_to_ptr.vmem [resolvable:$true] %s18_s14 }
   0x2   :  { %21 = dma.vmem_to_smem %s19_s14, 16, %s141_s15, [#allocation3]  }
   0x3   :  { %139 = dma.done.wait [#allocation3], 16  }
   0x4   :  { %140 = vsyncadd [#allocation3], 4294967280 }
   0x5   :  { %26 = sfence }
   0x6   :  { %v27_v0 = vld [vmem:[%s174_s0] sm:$0xff]  ;;  %s120_s18 = sld [smem:[#allocation2 + $0x1]]  ;;  %v108_v58 = vlaneseq  ;;  %vm112_vm7 = vcmask 57344  }
   0x7   :  { %v29_v1 = vmul.f32 0.70710677, %v27_v0  ;;  %v28_v36 = vmul.f32 0.5, %v27_v0  ;;  %v122_v39 = vld [vmem:[%s175_s1] ss:$0 sm:$0xff]  ;;  %s99_s19 = sld [smem:[#allocation2]] }
   0x8   :  { %v109_v63 = vand.u32 127, %v108_v58 }
   0x9   :  { %v30_v2 = vmul.f32 %v29_v1, %v29_v1 }
   0xb   :  { %v31_v3 = vmin.f32 %v30_v2, 16.0 }
   0xc   :  { %v101_v52 = vstv %s120_s18 }
   0xd   :  { %v32_v4 = vmul.f32 2.1237322e-06, %v31_v3  ;;  %v43_v5 = vmul.f32 3.8918573e-05, %v31_v3  ;;  %v105_v61 = vstv %s99_s19 }
   0xf   :  { %v33_v6 = vadd.f32 0.00028619796, %v32_v4  ;;  %v44_v7 = vadd.f32 0.001143296, %v43_v5 }
  0x11   :  { %v34_v8 = vmul.f32 %v33_v6, %v31_v3  ;;  %v45_v9 = vmul.f32 %v44_v7, %v31_v3 }
  0x13   :  { %v35_v10 = vadd.f32 0.0036580483, %v34_v8  ;;  %v46_v11 = vadd.f32 0.014752088, %v45_v9 }
  0x15   :  { %v36_v12 = vmul.f32 %v35_v10, %v31_v3  ;;  %v47_v13 = vmul.f32 %v46_v11, %v31_v3 }
  0x17   :  { %v48_v14 = vadd.f32 0.112945676, %v47_v13  ;;  %v37_v15 = vadd.f32 0.05243302, %v36_v12 }
  0x19   :  { %v49_v16 = vmul.f32 %v48_v14, %v31_v3  ;;  %v38_v18 = vmul.f32 %v37_v15, %v31_v3 }
  0x1b   :  { %v50_v17 = vadd.f32 0.4994258, %v49_v16  ;;  %v39_v21 = vadd.f32 0.18741608, %v38_v18 }
  0x1d   :  { %v51_v19 = vmul.f32 %v50_v17, %v31_v3  ;;  %v40_v22 = vmul.f32 %v39_v21, %v31_v3 }
  0x1f   :  { %v52_v20 = vadd.f32 1.0, %v51_v19  ;;  %v41_v25 = vadd.f32 1.1283791, %v40_v22 }
  0x21   :  { %123 = vrcp.f32 %v52_v20  ;;  %v64_v26 = vand.u32 2147483648, %v52_v20  ;;  %vm58_vm0 = vweird.f32 %v52_v20  ;;  %v62_v28 = vand.u32 2147483647, %v52_v20 }
  0x22   :  { %v42_v31 = vmul.f32 %v41_v25, %v29_v1 }
  0x23   :  { %v65_v30 = vor.u32 1.1754944e-38, %v64_v26  ;;  %vm63_vm3 = vcmp.eq.f32.partialorder %v62_v28, 8.507059e+37 }
  0x27   :  { %v124_v23 = vpop.eup %123 }
  0x28   :  { %v54_v24 = vmul.f32 %v124_v23, %v52_v20  ;;  %vm59_vm1 = vweird.f32 %v124_v23 }
  0x29   :  { %vm60_vm2 = vmor %vm58_vm0, %vm59_vm1 }
  0x2a   :  { %v55_v27 = vsub.f32 1.0, %v54_v24 }
  0x2c   :  { %v56_v29 = vmul.f32 %v124_v23, %v55_v27 }
  0x2e   :  { %v57_v32 = vadd.f32 %v124_v23, %v56_v29 }
  0x30   :  { %v61_v33 = vsel %vm60_vm2, %v124_v23, %v57_v32 }
  0x31   :  { %v66_v34 = vsel %vm63_vm3, %v65_v30, %v61_v33 }
  0x32   :  { %v67_v35 = vmul.f32 %v66_v34, %v42_v31 }
  0x34   :  { %v119_v37 = vclamps-f32 %v67_v35, 1.0 }
  0x36   :  { %v70_v38 = vadd.f32 1.0, %v119_v37 }
  0x38   :  { %v71_v40 = vmul.f32 %v70_v38, %v28_v36 }
  0x3a   :  { %72 = vadd.xlane.f32.xlu0 %v71_v40  ;;  %v81_v41 = vmul.f32 %v122_v39, %v71_v40  ;;  %v74_v42 = vmul.f32 %v71_v40, %v71_v40 }
  0x3c   :  { %82 = vadd.xlane.f32.xlu1 %v81_v41 }
  0x42   :  { %75 = vadd.xlane.f32.xlu0 %v74_v42 }
  0xad   :  { %v73_v43 = vpop.xlane.xlu0 %72 }
  0xae   :  { %v84_v44 = vmul.f32 0.0078125, %v73_v43 }
  0xaf   :  { %v83_v56 = vpop.xlane.xlu1 %82 }
  0xb0   :  { %v86_v46 = vmul.f32 %v84_v44, %v84_v44  ;;  %v102_v55 = vmul.f32 %v101_v52, %v84_v44 }
  0xb2   :  { %v103_v60 = vsub.f32 %v83_v56, %v102_v55 }
  0xb5   :  { %v76_v45 = vpop.xlane.xlu0 %75 }
  0xb6   :  { %v85_v47 = vmul.f32 0.0078125, %v76_v45 }
  0xb8   :  { %v87_v48 = vsub.f32 %v85_v47, %v86_v46 }
  0xba   :  { %v88_v49 = vadd.f32 1e-05, %v87_v48 }
  0xbc   :  { %125 = vrsqrt.f32 %v88_v49  ;;  %vm95_vm5 = vweird.f32 %v88_v49 }
  0xc2   :  { %v126_v50 = vpop.eup %125 }
  0xc3   :  { %v90_v51 = vmul.f32 %v126_v50, %v88_v49  ;;  %vm96_vm4 = vweird.f32 %v126_v50 }
  0xc4   :  { %vm97_vm6 = vmor %vm95_vm5, %vm96_vm4 }
  0xc5   :  { %v91_v53 = vmul.f32 %v126_v50, %v90_v51 }
  0xc7   :  { %v92_v54 = vmul.f32 0.5, %v91_v53 }
  0xc9   :  { %v93_v57 = vsub.f32 1.5, %v92_v54 }
  0xcb   :  { %v94_v59 = vmul.f32 %v126_v50, %v93_v57 }
  0xcd   :  { %v98_v62 = vsel %vm97_vm6, %v126_v50, %v94_v59 }
  0xce   :  { %v104_v0 = vmul.f32 %v103_v60, %v98_v62 }
  0xd0   :  { %v106_v1 = vadd.f32 %v105_v61, %v104_v0 }
  0xd2   :  { %v110_v2 = vperm.slane %v106_v1, %v109_v63 }
  0xd4   :  { %113 = vst.msk [vmem:[%s177_s3] sm:$0x1] %vm112_vm7, %v110_v2 }
  0xd5   :  { %118 = vsyncpa [#allocation3], 1 }

</bundles_post_ra>
